<compile_context>
chip_gen: v7x
topology: tpu7x:2x2x1
jax: 0.10.0
libtpu: 0.0.40
codegen_flags: <defaults>
</compile_context>

<pallas_src>
import math
import jax
import jax.numpy as jnp
from jax.experimental import pallas as pl
from jax.experimental.pallas import tpu as pltpu


def _round_up(x, m):
    return ((x + m - 1) // m) * m


def _mlp_kernel(x_ref, w1_ref, b1_ref, w2_ref, b2_ref, o_ref):
    # x_ref:  (tm, Dp)   bf16 row tile of the input
    # w1_ref: (Dp, th)   bf16 fc1 weight chunk (in, out)
    # b1_ref: (1, th)    f32  fc1 bias chunk
    # w2_ref: (th, Dp)   bf16 fc2 weight chunk (in, out)
    # b2_ref: (1, Dp)    f32  fc2 bias (full)
    # o_ref:  (tm, Dp)   f32  output row tile; doubles as the fc2 accumulator
    #                    (its block index is constant across the hidden axis j,
    #                     so it stays VMEM-resident for the whole reduction).
    j = pl.program_id(1)

    @pl.when(j == 0)
    def _():
        # Initialize the accumulator with the fc2 bias (saves a final add+copy).
        o_ref[...] = jnp.broadcast_to(b2_ref[...], o_ref.shape)

    # fc1 chunk: (tm, Dp) x (Dp, th) -> (tm, th), bf16 MXU inputs, f32 accumulation
    h = jnp.dot(x_ref[...], w1_ref[...], preferred_element_type=jnp.float32)
    h = h + b1_ref[...]

    # exact GELU (matches torch.nn.GELU() default): 0.5*x*(1 + erf(x/sqrt(2)))
    inv_sqrt2 = jnp.float32(0.7071067811865476)
    h = 0.5 * h * (1.0 + jax.lax.erf(h * inv_sqrt2))

    # fc2 partial: (tm, th) x (th, Dp) -> accumulate into the resident output tile
    o_ref[...] += jnp.dot(h.astype(jnp.bfloat16), w2_ref[...],
                          preferred_element_type=jnp.float32)


def _working_set_bytes(tm, th, dp):
    # Double-buffered pipeline buffers (x bf16, out f32, weight chunks bf16, biases).
    return (2 * tm * dp * 2          # x tile (bf16)
            + 2 * tm * dp * 4        # out tile / accumulator (f32)
            + 2 * dp * th * 2        # w1 chunk (bf16)
            + 2 * th * dp * 2        # w2 chunk (bf16)
            + 2 * (th * 4 + dp * 4)) # bias chunks (f32)


def mlp_pallas(x, w1, b1, w2, b2, *, row_tile=512, hidden_tile=1024):
    """x: [B, S, D] float32, w1: [D, 4D], b1: [4D], w2: [4D, D], b2: [D].

    Weights are stored as [in_features, out_features] (transposed vs nn.Linear).
    Returns [B, S, D] in x.dtype.
    """
    B, S, D = x.shape
    H = w1.shape[1]
    assert w1.shape == (D, H) and b1.shape == (H,)
    assert w2.shape == (H, D) and b2.shape == (D,)

    N = B * S

    # --- device VMEM budget ----------------------------------------------------
    try:
        vmem_cap = int(pltpu.get_tpu_info().vmem_capacity_bytes)
    except Exception:
        vmem_cap = 64 << 20  # conservative (v7x-sized) fallback
    budget = int(vmem_cap * 0.75)

    # --- tile / padding selection (lane-dense, MXU-friendly) --------------------
    D_p = _round_up(D, 128)                      # lane-dense model dim
    H_p = _round_up(H, 128)
    th = _round_up(min(hidden_tile, H_p), 128)

    n_rows_p = _round_up(N, 8)
    tm = min(_round_up(row_tile, 8), n_rows_p)
    if n_rows_p > 8 and tm >= n_rows_p:
        # Ensure the parallel (row) axis has >= 2 steps so both v7x TCs are used.
        tm = _round_up((n_rows_p + 1) // 2, 8)
    tm = max(tm, 8)

    # Shrink tiles until the double-buffered working set fits the VMEM budget.
    while _working_set_bytes(tm, th, D_p) > budget and th > 128:
        th = _round_up(max(128, th // 2), 128)
    while _working_set_bytes(tm, th, D_p) > budget and tm > 8:
        tm = _round_up(max(8, tm // 2), 8)

    N_p = _round_up(N, tm)
    H_p = _round_up(H_p, th)                     # make th divide H_p exactly

    # --- pad operands (zero padding contributes nothing to the result) ----------
    x2 = jnp.pad(x.reshape(N, D), ((0, N_p - N), (0, D_p - D))).astype(jnp.bfloat16)
    w1_p = jnp.pad(w1, ((0, D_p - D), (0, H_p - H))).astype(jnp.bfloat16)
    b1_p = jnp.pad(b1, (0, H_p - H)).reshape(1, H_p).astype(jnp.float32)
    w2_p = jnp.pad(w2, ((0, H_p - H), (0, D_p - D))).astype(jnp.bfloat16)
    b2_p = jnp.pad(b2, (0, D_p - D)).reshape(1, D_p).astype(jnp.float32)

    grid = (N_p // tm, H_p // th)                # rows parallel, hidden (reduction) last

    # --- VMEM limit: derived from the tile budget, clamped to physical VMEM -----
    ws = _working_set_bytes(tm, th, D_p)
    vmem_limit = int(ws * 1.5) + (4 << 20)
    vmem_limit = max(vmem_limit, 16 << 20)
    vmem_limit = min(vmem_limit, vmem_cap - (4 << 20))

    n_row_tiles = N_p // tm
    cost = pl.CostEstimate(
        flops=4 * N_p * D_p * H_p,                               # two matmuls
        transcendentals=N_p * H_p,                               # erf per hidden element
        bytes_accessed=(x2.size * 2                              # x (bf16)
                        + n_row_tiles * (w1_p.size * 2 + w2_p.size * 2)  # weight re-stream
                        + b1_p.size * 4 + b2_p.size * 4
                        + N_p * D_p * 4),                        # output (f32)
    )

    out2 = pl.pallas_call(
        _mlp_kernel,
        out_shape=jax.ShapeDtypeStruct((N_p, D_p), jnp.float32),
        grid_spec=pltpu.PrefetchScalarGridSpec(
            num_scalar_prefetch=0,
            grid=grid,
            in_specs=[
                pl.BlockSpec((tm, D_p), lambda i, j: (i, 0)),   # x row tile
                pl.BlockSpec((D_p, th), lambda i, j: (0, j)),   # w1 hidden chunk
                pl.BlockSpec((1, th),   lambda i, j: (0, j)),   # b1 hidden chunk
                pl.BlockSpec((th, D_p), lambda i, j: (j, 0)),   # w2 hidden chunk
                pl.BlockSpec((1, D_p),  lambda i, j: (0, 0)),   # b2 (full)
            ],
            out_specs=pl.BlockSpec((tm, D_p), lambda i, j: (i, 0)),
        ),
        compiler_params=pltpu.CompilerParams(
            dimension_semantics=("parallel", "arbitrary"),
            vmem_limit_bytes=vmem_limit,
        ),
        cost_estimate=cost,
    )(x2, w1_p, b1_p, w2_p, b2_p)

    return out2[:N, :D].reshape(B, S, D).astype(x.dtype)


def _init_params(key, d_model):
    """Deterministic init mimicking nn.Linear's uniform(-1/sqrt(fan_in), +)."""
    h = d_model * 4
    k1, k2, k3, k4 = jax.random.split(key, 4)
    lim1 = 1.0 / math.sqrt(d_model)
    lim2 = 1.0 / math.sqrt(h)
    w1 = jax.random.uniform(k1, (d_model, h), jnp.float32, -lim1, lim1)
    b1 = jax.random.uniform(k2, (h,), jnp.float32, -lim1, lim1)
    w2 = jax.random.uniform(k3, (h, d_model), jnp.float32, -lim2, lim2)
    b2 = jax.random.uniform(k4, (d_model,), jnp.float32, -lim2, lim2)
    return w1, b1, w2, b2


def _reference(x, w1, b1, w2, b2):
    h = x @ w1 + b1
    h = 0.5 * h * (1.0 + jax.lax.erf(h / jnp.sqrt(jnp.float32(2.0))))
    return h @ w2 + b2


if __name__ == "__main__":
    B, S, D = 2, 8, 32  # batch, seq, d_model -> hidden = 128
    key = jax.random.PRNGKey(0)
    kx, kp = jax.random.split(key)
    x = jax.random.normal(kx, (B, S, D), jnp.float32)
    w1, b1, w2, b2 = _init_params(kp, D)

    out = mlp_pallas(x, w1, b1, w2, b2)
    out = jax.block_until_ready(out)

    ref = _reference(x, w1, b1, w2, b2)
    assert out.shape == (B, S, D)
    # bf16 MXU inputs / bf16 activations (f32 accumulation) -> relaxed tolerance
    # vs the pure-f32 reference.
    assert jnp.allclose(out, ref, atol=2e-2, rtol=2e-2), "mismatch vs reference"

    print("KERNEL_OK")
</pallas_src>

<mosaic_0001>
module attributes {stable_mosaic.version = 11 : i64} {
  func.func @_mlp_kernel(%arg0: i32, %arg1: i32, %arg2: memref<8x128xbf16, #tpu.memory_space<vmem>>, %arg3: memref<128x128xbf16, #tpu.memory_space<vmem>>, %arg4: memref<1x128xf32, #tpu.memory_space<vmem>>, %arg5: memref<128x128xbf16, #tpu.memory_space<vmem>>, %arg6: memref<1x128xf32, #tpu.memory_space<vmem>>, %arg7: memref<8x128xf32, #tpu.memory_space<vmem>>) attributes {dimension_semantics = [#tpu.dimension_semantics<parallel>, #tpu.dimension_semantics<arbitrary>], iteration_bounds = array<i64: 2, 1>, scalar_prefetch = 0 : i64, scratch_operands = 0 : i64, tpu.core_type = #tpu.core_type<tc>, window_params = [{transform_indices = @transform_0, window_bounds = array<i64: 8, 128>}, {transform_indices = @transform_1, window_bounds = array<i64: 128, 128>}, {transform_indices = @transform_2, window_bounds = array<i64: 1, 128>}, {transform_indices = @transform_3, window_bounds = array<i64: 128, 128>}, {pipeline_mode = #tpu.pipeline_mode<synchronous>, transform_indices = @transform_4, window_bounds = array<i64: 1, 128>}, {transform_indices = @transform_5, window_bounds = array<i64: 8, 128>}]} {
    %c0_i32 = arith.constant 0 : i32
    %0 = arith.cmpi eq, %arg1, %c0_i32 : i32
    %1 = arith.extui %0 : i1 to i32
    %c0_i32_0 = arith.constant 0 : i32
    %2 = arith.cmpi ne, %1, %c0_i32_0 : i32
    scf.if %2 {
      %c0_16 = arith.constant 0 : index
      %c0_17 = arith.constant 0 : index
      %23 = vector.load %arg6[%c0_16, %c0_17] : memref<1x128xf32, #tpu.memory_space<vmem>>, vector<1x128xf32>
      %24 = vector.shape_cast %23 : vector<1x128xf32> to vector<1x128xf32>
      %25 = vector.broadcast %24 : vector<1x128xf32> to vector<8x128xf32>
      %c0_18 = arith.constant 0 : index
      %c0_19 = arith.constant 0 : index
      %26 = vector.load %arg7[%c0_18, %c0_19] : memref<8x128xf32, #tpu.memory_space<vmem>>, vector<8x128xf32>
      tpu.vector_store %arg7[%c0_18, %c0_19], %25 {strides = array<i32>} : memref<8x128xf32, #tpu.memory_space<vmem>>, vector<8x128xf32>,
    } else {
    }
    %c0 = arith.constant 0 : index
    %c0_1 = arith.constant 0 : index
    %3 = vector.load %arg2[%c0, %c0_1] : memref<8x128xbf16, #tpu.memory_space<vmem>>, vector<8x128xbf16>
    %c0_2 = arith.constant 0 : index
    %c0_3 = arith.constant 0 : index
    %4 = vector.load %arg3[%c0_2, %c0_3] : memref<128x128xbf16, #tpu.memory_space<vmem>>, vector<128x128xbf16>
    %cst = arith.constant dense<0.000000e+00> : vector<8x128xf32>
    %5 = tpu.matmul %3, %4, %cst {dimension_numbers = #tpu.dot_dimension_numbers<[1], [0], [0], [1], [0, 0, 1, 1], [], []>} : vector<8x128xbf16>, vector<128x128xbf16>, vector<8x128xf32> -> vector<8x128xf32>
    %c0_4 = arith.constant 0 : index
    %c0_5 = arith.constant 0 : index
    %6 = vector.load %arg4[%c0_4, %c0_5] : memref<1x128xf32, #tpu.memory_space<vmem>>, vector<1x128xf32>
    %7 = vector.broadcast %6 : vector<1x128xf32> to vector<8x128xf32>
    %8 = arith.addf %5, %7 : vector<8x128xf32>
    %cst_6 = arith.constant 5.000000e-01 : f32
    %9 = vector.broadcast %cst_6 : f32 to vector<8x128xf32>
    %10 = arith.mulf %9, %8 : vector<8x128xf32>
    %cst_7 = arith.constant 0.707106769 : f32
    %11 = vector.broadcast %cst_7 : f32 to vector<8x128xf32>
    %12 = arith.mulf %8, %11 : vector<8x128xf32>
    %13 = math.erf %12 : vector<8x128xf32>
    %cst_8 = arith.constant 1.000000e+00 : f32
    %14 = vector.broadcast %cst_8 : f32 to vector<8x128xf32>
    %15 = arith.addf %14, %13 : vector<8x128xf32>
    %16 = arith.mulf %10, %15 : vector<8x128xf32>
    %c0_9 = arith.constant 0 : index
    %c0_10 = arith.constant 0 : index
    %17 = vector.load %arg7[%c0_9, %c0_10] : memref<8x128xf32, #tpu.memory_space<vmem>>, vector<8x128xf32>
    %18 = arith.truncf %16 : vector<8x128xf32> to vector<8x128xbf16>
    %c0_11 = arith.constant 0 : index
    %c0_12 = arith.constant 0 : index
    %19 = vector.load %arg5[%c0_11, %c0_12] : memref<128x128xbf16, #tpu.memory_space<vmem>>, vector<128x128xbf16>
    %cst_13 = arith.constant dense<0.000000e+00> : vector<8x128xf32>
    %20 = tpu.matmul %18, %19, %cst_13 {dimension_numbers = #tpu.dot_dimension_numbers<[1], [0], [0], [1], [0, 0, 1, 1], [], []>} : vector<8x128xbf16>, vector<128x128xbf16>, vector<8x128xf32> -> vector<8x128xf32>
    %21 = arith.addf %17, %20 : vector<8x128xf32>
    %c0_14 = arith.constant 0 : index
    %c0_15 = arith.constant 0 : index
    %22 = vector.load %arg7[%c0_14, %c0_15] : memref<8x128xf32, #tpu.memory_space<vmem>>, vector<8x128xf32>
    tpu.vector_store %arg7[%c0_14, %c0_15], %21 {strides = array<i32>} : memref<8x128xf32, #tpu.memory_space<vmem>>, vector<8x128xf32>,
    return
  }
  func.func @transform_0(%arg0: i32, %arg1: i32) -> (i32, i32) {
    %c0_i32 = arith.constant 0 : i32
    %c0_i32_0 = arith.constant 0 : i32
    return %arg0, %c0_i32 : i32, i32
  }
  func.func @transform_1(%arg0: i32, %arg1: i32) -> (i32, i32) {
    %c0_i32 = arith.constant 0 : i32
    %c0_i32_0 = arith.constant 0 : i32
    return %c0_i32, %arg1 : i32, i32
  }
  func.func @transform_2(%arg0: i32, %arg1: i32) -> (i32, i32) {
    %c0_i32 = arith.constant 0 : i32
    %c0_i32_0 = arith.constant 0 : i32
    return %c0_i32, %arg1 : i32, i32
  }
  func.func @transform_3(%arg0: i32, %arg1: i32) -> (i32, i32) {
    %c0_i32 = arith.constant 0 : i32
    %c0_i32_0 = arith.constant 0 : i32
    return %arg1, %c0_i32 : i32, i32
  }
  func.func @transform_4(%arg0: i32, %arg1: i32) -> (i32, i32) {
    %c0_i32 = arith.constant 0 : i32
    %c0_i32_0 = arith.constant 0 : i32
    %c0_i32_1 = arith.constant 0 : i32
    return %c0_i32, %c0_i32_0 : i32, i32
  }
  func.func @transform_5(%arg0: i32, %arg1: i32) -> (i32, i32) {
    %c0_i32 = arith.constant 0 : i32
    %c0_i32_0 = arith.constant 0 : i32
    return %arg0, %c0_i32 : i32, i32
  }
}

</mosaic_0001>

<bundles_post_ra>
// kernel: tpu_custom_call.1
= control target key start
LH: loop header
LB: loop body
LE: loop exit
PB: predicated region body
PF: predicated region fallthrough
CT: control target
= control target key end

     0   :  { %10 = vsyncpa [#allocation3], 0  ;;  %s1347_s0 = inlined_call_operand.hbm [shape: bf16[16,128], index: 0, kind: input, shape index: {}]   ;;  %s1348_s1 = inlined_call_operand.hbm [shape: bf16[128,128], index: 1, kind: input, shape index: {}]   ;;  %s1349_s2 = inlined_call_operand.vmem [shape: f32[1,128], index: 2, kind: input, shape index: {}]   ;;  %s1350_s3 = inlined_call_operand.hbm [shape: bf16[128,128], index: 3, kind: input, shape index: {}]   ;;  %s1351_s4 = inlined_call_operand.vmem [shape: f32[1,128], index: 4, kind: input, shape index: {}]   ;;  %s1352_s5 = inlined_call_operand.hbm [shape: f32[16,128], index: 5, kind: output, shape index: {}]  }
   0x1   :  { %12 = vsyncpa [#allocation3 + $0x1], 0 }
   0x2   :  { %13 = vsyncpa [#allocation6], 0 }
   0x3   :  { %14 = vsyncpa [#allocation4], 0 }
   0x4   :  { %16 = vsyncpa [#allocation4 + $0x1], 0  ;;  %s1087_s18 = smov 0   ;;  %s1089_s19 = smov 0  }
   0x5   :  { %s1091_s20 = smov 0   ;;  %s1093_s21 = smov 0  }
   0x6   :  { %s1095_s22 = smov 0   ;;  %s1097_s23 = smov 0  }
   0x7 LB: > { %s676_s24 = sadd.s32 4294967295, %s1047_s23   ;;  %s677_s25 = sadd.s32 4294967294, %s1047_s23   ;;  %s1047_s23 = sphi %s1097_s23, %s22_s23   ;;  %s1043_s22 = sphi %s1095_s22, %s1374_s22   ;;  %s1039_s21 = sphi %s1093_s21, %s1373_s21   ;;  %s1035_s20 = sphi %s1091_s20, %s1372_s20   ;;  %s1031_s19 = sphi %s1089_s19, %s1371_s19   ;;  %s1027_s18 = sphi %s1087_s18, %s1370_s18  }
   0x8   : > { %p54_p0 = scmp.ne.s32.totalorder %s1031_s19, %s1027_s18  ;;  %p1121_p1 = scmp.eq.s32.totalorder %s676_s24, 0 }
   0x9   : > { %p1125_p2 = scmp.eq.s32.totalorder %s676_s24, 1  ;;  %p183_p3 = scmp.eq.s32.totalorder %s677_s25, 1 }
   0xa   : > { %s1357_s26 = scalar_select %p1121_p1, 1, 0 }
   0xb   : > { %p1131_p4 = por %p1121_p1, %p54_p0  ;;  %p678_p5 = scmp.ge.s32.totalorder %s1047_s23, 1 }
   0xc   : > { %p1136_p6 = por %p183_p3, %p54_p0  ;;  %p190_p7 = scmp.lt.s32.totalorder %s1047_s23, 3 }
   0xd   : > { %s1359_s28 = scalar_select %p1131_p4, 1, 0 }
   0xe   : > { %s1360_s29 = scalar_select %p1136_p6, 1, 0 }
   0xf   : > { %p1141_p8 = pnand %p678_p5, %p190_p7  ;;  %s1049_s6 = smov [#allocation5]  }
  0x10   : > { %s204_s7 = sshll.u32 %s1049_s6, 4  ;;  %s1050_s9 = smov [#allocation7]   ;;  %s1145_s7 = int_to_ptr.vmem [resolvable:$true] %s204_s7 }
  0x11   : > { %p782_p9 = pneg %p1141_p8  ;;  %s226_s10 = sshll.u32 %s1050_s9, 4  ;;  %s1156_s10 = int_to_ptr.vmem [resolvable:$true] %s226_s10 }
  0x12   : > { %s875_s13 = scalar_lea.hbm %s1348_s1, 1024 }
  0x13   : > { %p1152_p11 = pnand %p782_p9, %p1121_p1  ;;  %p876_p12 = scmp.ne.s32.totalorder %s1348_s1, %s875_s13 }
  0x14   : > { %p882_p5 = scmp.lt.u32.totalorder %s875_s13, %s1348_s1 }
  0x15   : > { %p877_p13 = pneg %p1152_p11 }
  0x17   : > { %p878_p0 = pnand %p877_p13, %p876_p12 }
  0x19   : > { %p879_p3 = pneg %p878_p0 }
  0x1b   : > { %p884_p7 = pnand %p882_p5, %p879_p3 }
  0x1d   : > { %887 = shalt.err (!%p884_p7)
}
  0x1e   : > { %s888_s24 = scalar_lea.vmem %s1145_s7, 1024  ;;  %p896_p1 = scmp.lt.s32.totalorder %s1145_s7, %s1145_s7 }
  0x1f   : > { %p889_p9 = scmp.ne.s32.totalorder %s1145_s7, %s888_s24  ;;  %p897_p12 = scmp.lt.s32.totalorder %s888_s24, %s888_s24 }
  0x21   : > { %p891_p10 = pnand %p889_p9, %p877_p13  ;;  %p898_p0 = por %p897_p12, %p896_p1 }
  0x23   : > { %p892_p6 = pneg %p891_p10 }
  0x25   : > { %p899_p4 = pnand %p898_p0, %p892_p6 }
  0x27   : > { %902 = shalt.err (!%p899_p4)
}
  0x28   : > { %s1051_s25 = smov 64   ;;  %s1052_s6 = smov 4  }
  0x29   : > { %785 = dma.hbm_to_vmem [thread:$0]  (!%p1152_p11), %s1348_s1, 1024, %s1145_s7, [#allocation6], %s1051_s25, %s1051_s25, %s1052_s6  }
  0x2a   : > { %s903_s14 = scalar_lea.hbm %s1350_s3, 1024 }
  0x2b   : > { %p904_p1 = scmp.ne.s32.totalorder %s1350_s3, %s903_s14  ;;  %p910_p10 = scmp.lt.u32.totalorder %s903_s14, %s1350_s3 }
  0x2d   : > { %p906_p4 = pnand %p904_p1, %p877_p13 }
  0x2f   : > { %p907_p6 = pneg %p906_p4 }
  0x31   : > { %p912_p3 = pnand %p910_p10, %p907_p6 }
  0x33   : > { %915 = shalt.err (!%p912_p3)
}
  0x34   : > { %s916_s7 = scalar_lea.vmem %s1156_s10, 1024  ;;  %p924_p12 = scmp.lt.s32.totalorder %s1156_s10, %s1156_s10 }
  0x35   : > { %p917_p5 = scmp.ne.s32.totalorder %s1156_s10, %s916_s7  ;;  %p925_p0 = scmp.lt.s32.totalorder %s916_s7, %s916_s7 }
  0x37   : > { %p919_p7 = pnand %p917_p5, %p877_p13  ;;  %p926_p1 = por %p925_p0, %p924_p12 }
  0x39   : > { %p920_p9 = pneg %p919_p7 }
  0x3b   : > { %p927_p4 = pnand %p926_p1, %p920_p9 }
  0x3d   : > { %930 = shalt.err (!%p927_p4)
}
  0x3e   : > { %788 = dma.hbm_to_vmem [thread:$0]  (!%p1152_p11), %s1350_s3, 1024, %s1156_s10, [#allocation6], %s1051_s25, %s1051_s25, %s1052_s6  }
  0x3f   : > { %s34_s12 = sadd.s32 1, %s1043_s22  ;;  %s41_s13 = sadd.s32 1, %s1035_s20 }
  0x40   : > { %p36_p13 = scmp.ge.s32.totalorder %s34_s12, 2  ;;  %p48_p6 = scmp.ne.s32.totalorder %s1035_s20, %s1031_s19 }
  0x41   : > { %p49_p10 = scmp.eq.s32.totalorder %s1047_s23, 0  ;;  %p799_p3 = scmp.lt.s32.totalorder %s1047_s23, 2 }
  0x42   : > { %s1376_s12 = smov (%p36_p13, %s34_s12), 0  ;;  %p1220_p7 = por %p1125_p2, %p48_p6 }
  0x43   : > { %p50_p5 = por %p49_p10, %p48_p6  ;;  %s38_s14 = ssub.s32 %s1043_s22, %s1376_s12 }
  0x44   : > { %s1363_s8 = scalar_select %p1220_p7, 1, 0 }
  0x45   : > { %s243_s15 = sand.u32 1, %s1035_s20   ;;  %p39_p9 = scmp.eq.s32.totalorder %s38_s14, 0 }
  0x46   : > { %s683_s10 = sshll.u32 %s243_s15, 2  ;;  %s684_s25 = sshll.u32 %s1043_s22, 6 }
  0x47   : > { %s1229_s6 = scalar_select %p39_p9, %s1035_s20, %s41_s13  }
  0x48   : > { %s1234_s24 = scalar_lea.hbm %s1347_s0, %s684_s25  ;;  %s247_s27 = scalar_lea.vmem [#allocation2], %s683_s10 }
  0x49   : > { %s254_s7 = sshll.u32 %s247_s27, 4  ;;  %p1238_p2 = pnand %p799_p3, %p50_p5  ;;  %s1242_s7 = int_to_ptr.vmem [resolvable:$true] %s254_s7 }
  0x4a   : > { %s244_s11 = scalar_lea.sflag [#allocation3], %s243_s15  ;;  %s931_s13 = scalar_lea.hbm %s1234_s24, 64 }
  0x4b   : > { %p932_p11 = scmp.ne.s32.totalorder %s1234_s24, %s931_s13  ;;  %p933_p12 = pneg %p1238_p2 }
  0x4c   : > { %s936_s25 = scalar_lea.hbm %s1347_s0, 128  ;;  %p937_p4 = scmp.lt.u32.totalorder %s1234_s24, %s1347_s0 }
  0x4d   : > { %p934_p0 = pnand %p933_p12, %p932_p11  ;;  %p938_p13 = scmp.lt.u32.totalorder %s936_s25, %s931_s13 }
  0x4e   : > { %p940_p10 = scmp.lt.u32.totalorder %s931_s13, %s1234_s24 }
  0x4f   : > { %p935_p1 = pneg %p934_p0  ;;  %p939_p6 = por %p938_p13, %p937_p4 }
  0x51   : > { %p941_p3 = por %p940_p10, %p939_p6 }
  0x53   : > { %p942_p5 = pnand %p941_p3, %p935_p1 }
  0x55   : > { %945 = shalt.err (!%p942_p5)
}
  0x56   : > { %s946_s15 = scalar_lea.vmem %s1242_s7, 64  ;;  %s1053_s27 = smov [#allocation2]  }
  0x57   : > { %p947_p9 = scmp.ne.s32.totalorder %s1242_s7, %s946_s15  ;;  %s951_s14 = sshll.u32 %s1053_s27, 4  ;;  %s952_s14 = int_to_ptr.vmem [resolvable:$false] %s951_s14 }
  0x58   : > { %s953_s10 = scalar_lea.vmem %s952_s14, 128  ;;  %p954_p7 = scmp.lt.s32.totalorder %s1242_s7, %s952_s14 }
  0x59   : > { %p949_p11 = pnand %p947_p9, %p933_p12  ;;  %p955_p4 = scmp.lt.s32.totalorder %s953_s10, %s946_s15 }
  0x5b   : > { %p950_p0 = pneg %p949_p11  ;;  %p956_p13 = por %p955_p4, %p954_p7 }
  0x5d   : > { %p957_p6 = pnand %p956_p13, %p950_p0 }
  0x5f   : > { %960 = shalt.err (!%p957_p6)
}
  0x60   : > { %792 = dma.hbm_to_vmem [thread:$0]  (!%p1238_p2), %s1234_s24, 64, %s1242_s7, %s244_s11  }
  0x61   : > { %263 = sbr.rel (%p1141_p8) target bundleno = 603 (0x25b), region = 40  ;;  %s1272_s13 = sand.u32 (!%p1141_p8), 1, %s1031_s19  }
  0x62   : > { %s686_s25 = sshll.u32 (!%p1141_p8), %s1272_s13, 2  ;;  %s266_s16 = scalar_lea.sflag (!%p1141_p8), [#allocation3], %s1272_s13 }
  0x63   : > { %s1276_s17 = scalar_lea.vmem (!%p1141_p8), [#allocation2], %s686_s25  ;;  %p1365_p7 = scmp.ne.s32.totalorder (!%p1141_p8), %s1359_s28, 0 }
  0x68   : > { %1014 = dma.done.wait (%p1365_p7), %s266_s16, 64  }
  0x69   : > { %1016 = vsyncadd (%p1365_p7), %s266_s16, 4294967232  ;;  %p1366_p2 = scmp.ne.s32.totalorder %s1357_s26, 0 }
  0x6b   : > { %1018 = dma.done.wait (%p1366_p2), [#allocation6], 2048  }
  0x6c   : > { %1020 = vsyncadd (%p1366_p2), [#allocation6], 4294965248  ;;  %v1054_v0 = vmov 0.0   ;;  %vm1055_vm0 = vmmov 0   ;;  %v857_v1 = vld [vmem:[#allocation5] sm:$0xff]   ;;  %v858_v2 = vld [vmem:[#allocation5 + $0x8] sm:$0xff]  }
  0x6d   : > { %730 = vmatprep.subr.bf16.mxu0 %v1054_v0  ;;  %746 = vmatprep.mubr.msk.bf16.mxu0 %vm1055_vm0, %v1054_v0  ;;  %v859_v3 = vld [vmem:[#allocation5 + $0x10] sm:$0xff]   ;;  %v865_v4 = vld [vmem:[#allocation7] sm:$0xff]   ;;  %v860_v5 = vld [vmem:[#allocation5 + $0x18] sm:$0xff]   ;;  %s689_s30 = sshll.u32 %s1272_s13, 3  ;;  %s709_s9 = sshll.u32 %s1039_s21, 7 }
  0x6e   : > { %750 = vmatprep.subr.bf16.mxu1 %v1054_v0  ;;  %766 = vmatprep.mubr.msk.bf16.mxu1 %vm1055_vm0, %v1054_v0  ;;  %v866_v6 = vld [vmem:[#allocation7 + $0x8] sm:$0xff]   ;;  %v861_v7 = vld [vmem:[#allocation5 + $0x20] sm:$0xff]   ;;  %v867_v8 = vld [vmem:[#allocation7 + $0x10] sm:$0xff]   ;;  %s306_s11 = scalar_lea.vmem [#allocation8], %s689_s30  ;;  %s1298_s10 = scalar_lea.hbm %s1352_s5, %s709_s9 }
  0x6f   : > { %731 = vmatpush3.bf16.msra.mxu0 %v857_v1  ;;  %751 = vmatpush3.bf16.msra.mxu1 %v865_v4  ;;  %v862_v9 = vld [vmem:[#allocation5 + $0x28] sm:$0xff]   ;;  %v863_v10 = vld [vmem:[#allocation5 + $0x30] sm:$0xff]   ;;  %v864_v11 = vld [vmem:[#allocation5 + $0x38] sm:$0xff]   ;;  %s563_s15 = sshll.u32 %s306_s11, 4  ;;  %s550_s25 = scalar_lea.sflag [#allocation4], %s1272_s13  ;;  %s1300_s15 = int_to_ptr.vmem [resolvable:$true] %s563_s15 }
  0x70   : > { %732 = vmatprep.subr.bf16.mxu0 %v1054_v0  ;;  %752 = vmatprep.subr.bf16.mxu1 %v1054_v0  ;;  %v324_v12 = vld [vmem:[%s1276_s17] sm:$0xf]  ;;  %v869_v14 = vld [vmem:[#allocation7 + $0x20] sm:$0xff]   ;;  %v870_v15 = vld [vmem:[#allocation7 + $0x28] sm:$0xff]   ;;  %s961_s21 = scalar_lea.vmem %s1300_s15, 128  ;;  %p1367_p12 = scmp.ne.s32.totalorder %s1363_s8, 0 }
  0x71   : > { %v868_v13 = vld [vmem:[#allocation7 + $0x18] sm:$0xff]   ;;  %v871_v16 = vld [vmem:[#allocation7 + $0x30] sm:$0xff]   ;;  %p962_p8 = scmp.ne.s32.totalorder %s1300_s15, %s961_s21  ;;  %s1056_s16 = smov [#allocation8]  }
  0x72   : > { %v872_v17 = vld [vmem:[#allocation7 + $0x38] sm:$0xff]   ;;  %s965_s17 = sshll.u32 %s1056_s16, 4  ;;  %s966_s17 = int_to_ptr.vmem [resolvable:$false] %s965_s17 }
  0x73   : > { %733 = vmatpush3.bf16.msra.mxu0 %v858_v2  ;;  %753 = vmatpush3.bf16.msra.mxu1 %v866_v6  ;;  %v691_v18 = vld [vmem:[%s1349_s2] ss:$0 sm:$0xff]  ;;  %p963_p1 = pnand %p962_p8, %p1367_p12  ;;  %s967_s26 = scalar_lea.vmem %s966_s17, 256 }
  0x74   : > { %734 = vmatprep.subr.bf16.mxu0 %v1054_v0  ;;  %754 = vmatprep.subr.bf16.mxu1 %v1054_v0  ;;  %v690_v30 = vld [vmem:[%s1351_s4] ss:$0 sm:$0xff]  ;;  %p968_p3 = scmp.lt.s32.totalorder %s1300_s15, %s966_s17  ;;  %p969_p5 = scmp.lt.s32.totalorder %s967_s26, %s961_s21 }
  0x75   : > { %p964_p10 = pneg %p963_p1 }
  0x76   : > { %p970_p9 = por %p969_p5, %p968_p3 }
  0x77   : > { %735 = vmatpush3.bf16.msra.mxu0 %v859_v3  ;;  %755 = vmatpush3.bf16.msra.mxu1 %v867_v8 }
  0x78   : > { %736 = vmatprep.subr.bf16.mxu0 %v1054_v0  ;;  %756 = vmatprep.subr.bf16.mxu1 %v1054_v0  ;;  %p971_p11 = pnand %p970_p9, %p964_p10 }
  0x7b   : > { %737 = vmatpush3.bf16.msra.mxu0 %v860_v5  ;;  %757 = vmatpush3.bf16.msra.mxu1 %v868_v13 }
  0x7c   : > { %738 = vmatprep.subr.bf16.mxu0 %v1054_v0  ;;  %758 = vmatprep.subr.bf16.mxu1 %v1054_v0 }
  0x7f   : > { %739 = vmatpush3.bf16.msra.mxu0 %v861_v7  ;;  %759 = vmatpush3.bf16.msra.mxu1 %v869_v14 }
  0x80   : > { %740 = vmatprep.subr.bf16.mxu0 %v1054_v0  ;;  %760 = vmatprep.subr.bf16.mxu1 %v1054_v0 }
  0x83   : > { %741 = vmatpush3.bf16.msra.mxu0 %v862_v9  ;;  %761 = vmatpush3.bf16.msra.mxu1 %v870_v15 }
  0x84   : > { %742 = vmatprep.subr.bf16.mxu0 %v1054_v0  ;;  %762 = vmatprep.subr.bf16.mxu1 %v1054_v0 }
  0x87   : > { %743 = vmatpush3.bf16.msra.mxu0 %v863_v10  ;;  %763 = vmatpush3.bf16.msra.mxu1 %v871_v16 }
  0x88   : > { %744 = vmatprep.subr.bf16.mxu0 %v1054_v0  ;;  %764 = vmatprep.subr.bf16.mxu1 %v1054_v0 }
  0x8b   : > { %745 = vmatpush3.bf16.msra.mxu0 %v864_v11  ;;  %765 = vmatpush3.bf16.msra.mxu1 %v872_v17 }
  0x8e   : > { %747 = vmatmul.mubr.bf16.vlgmr.msra.gmra.mrb[0].mxu0 %v324_v12 }
 0x161   : > { %v430_v19 = vpop.f32.mrb[0].mxu0 }
 0x162   : > { %v431_v20 = vadd.f32 %v691_v18, %v430_v19  ;;  %v748_v21 = vpop.f32.mrb[1].mxu0 }
 0x163   : > { %v433_v22 = vpop.f32.mrb[2].mxu0 }
 0x164   : > { %v437_v23 = vmul.f32 0.70710677, %v431_v20  ;;  %v749_v24 = vpop.f32.mrb[3].mxu0  ;;  %v436_v26 = vmul.f32 0.5, %v431_v20 }
 0x166   : > { %873 = verf.f32 %v437_v23 }
 0x170   : > { %v874_v25 = vpop.eup %873 }
 0x171   : > { %v439_v27 = vadd.f32 1.0, %v874_v25 }
 0x173   : > { %v440_v28 = vmul.f32 %v439_v27, %v436_v26 }
 0x175   : > { %v442_v29 = vpack.c.bf16 %v440_v28, %v440_v28 }
 0x177   : > { %767 = vmatmul.mubr.bf16.vlgmr.msra.gmra.mrb[0].mxu1 %v442_v29 }
 0x24a   : > { %v541_v31 = vpop.f32.mrb[0].mxu1 }
 0x24b   : > { %v547_v32 = vadd.f32 %v690_v30, %v541_v31  ;;  %v768_v33 = vpop.f32.mrb[1].mxu1 }
 0x24c   : > { %v544_v34 = vpop.f32.mrb[2].mxu1 }
 0x24d   : > { %548 = vst [vmem:[%s306_s11] sm:$0xff] %v547_v32  ;;  %v769_v35 = vpop.f32.mrb[3].mxu1 }
 0x24e   : > { %974 = shalt.err (!%p971_p11)
}
 0x24f   : > { %s975_s13 = scalar_lea.hbm %s1298_s10, 128  ;;  %s979_s24 = scalar_lea.hbm %s1352_s5, 256 }
 0x250   : > { %p976_p0 = scmp.ne.s32.totalorder %s1298_s10, %s975_s13  ;;  %p980_p6 = scmp.lt.u32.totalorder %s1298_s10, %s1352_s5 }
 0x251   : > { %p981_p7 = scmp.lt.u32.totalorder %s979_s24, %s975_s13  ;;  %p983_p8 = scmp.lt.u32.totalorder %s975_s13, %s1298_s10 }
 0x252   : > { %p977_p4 = pnand %p976_p0, %p1367_p12 }
 0x253   : > { %p982_p2 = por %p981_p7, %p980_p6 }
 0x254   : > { %p978_p13 = pneg %p977_p4 }
 0x255   : > { %p984_p1 = por %p983_p8, %p982_p2 }
 0x257   : > { %p985_p10 = pnand %p984_p1, %p978_p13 }
 0x259   : > { %988 = shalt.err (!%p985_p10)
}
 0x25a   : > { %780 = dma.vmem_to_hbm [thread:$0]  (%p1367_p12), %s1300_s15, 128, %s1298_s10, %s550_s25  }
 0x25b PF: > { %s575_s11 = sand.u32 1, %s1027_s18   ;;  %p1368_p3 = scmp.ne.s32.totalorder %s1360_s29, 0 }
 0x25c   : > { %p1369_p5 = scmp.ge.s32.totalorder %s1047_s23, 2  ;;  %s576_s27 = scalar_lea.sflag [#allocation4], %s575_s11 }
 0x25e   : > { %p794_p9 = pnand %p1369_p5, %p1368_p3 }
 0x260   : > { %1022 = dma.done.wait (!%p794_p9), %s576_s27, 128  }
 0x261   : > { %1024 = vsyncadd (!%p794_p9), %s576_s27, 4294967168  ;;  %s22_s23 = sadd.s32 1, %s1047_s23   ;;  %s1370_s18 = smov %s1031_s19 }
 0x262   : > { %p19_p11 = scmp.ge.s32.totalorder %s22_s23, 4   ;;  %s1371_s19 = smov %s1035_s20 }
 0x263   : > { %s1372_s20 = smov %s1229_s6  ;;  %s1373_s21 = smov %s1043_s22 }
 0x264   : > { %s1374_s22 = smov %s1376_s12  ;;  %21 = sbr.rel (!%p19_p11) target bundleno = 7 (0x7), region = 102 }
 0x26b   :  { %581 = vsyncpa [#allocation3], 1 }
 0x26c   :  { %583 = vsyncpa [#allocation3 + $0x1], 1 }
 0x26d   :  { %584 = vsyncpa [#allocation6], 1 }
 0x26e   :  { %585 = vsyncpa [#allocation4], 1 }
 0x26f   :  { %587 = vsyncpa [#allocation4 + $0x1], 1 }

</bundles_post_ra>
